<compile_context>
chip_gen: v7x
topology: tpu7x:2x2x1
jax: 0.10.0
libtpu: 0.0.40
codegen_flags: <defaults>
</compile_context>

<pallas_src>
import jax
import jax.numpy as jnp
from jax.experimental import pallas as pl
from jax.experimental.pallas import tpu as pltpu

_LANES = 128
_SUBLANES = 8
_DEFAULT_TILE_M = 2048          # rows of 128 lanes per block (1 MiB for f32)
_MIN_GRID_STEPS = 4             # keep >=4 steps so v7x megacore can split the grid
_VMEM_LIMIT_BYTES = 32 * 1024 * 1024


def _mlp_kernel(params_ref, x_ref, o_ref):
    # params_ref: (4,) f32 in SMEM -> [w1, b1, w2, b2]
    w1 = params_ref[0]
    b1 = params_ref[1]
    w2 = params_ref[2]
    b2 = params_ref[3]

    x = x_ref[...].astype(jnp.float32)   # (TILE_M, 128), lane-dense, native-dtype DMA
    h = jnp.maximum(x * w1 + b1, 0.0)    # Linear(1,1) + ReLU, pure VPU
    y = h * w2 + b2                      # Linear(1,1)
    o_ref[...] = y.astype(o_ref.dtype)


def _round_up(v, m):
    return ((v + m - 1) // m) * m


def simple_model_forward(x, w1, b1, w2, b2, tile_m=_DEFAULT_TILE_M):
    """x: (..., 1) array; w1,b1,w2,b2: scalar-shaped params. Returns same shape/dtype as x."""
    orig_shape = x.shape
    dtype = x.dtype
    n = int(x.size)

    # Sublane packing depends on dtype width: f32 -> 8 rows, bf16 -> 16, int8 -> 32.
    itemsize = jnp.dtype(dtype).itemsize
    sub = _SUBLANES * max(1, 4 // itemsize)

    # Lane-dense slab: pad flat length only to the next (sub x 128) boundary (tiny).
    m_rows = _round_up(pl.cdiv(max(n, 1), _LANES), sub)
    total = m_rows * _LANES

    x_flat = jnp.ravel(x)
    if total != n:
        x_flat = jnp.pad(x_flat, (0, total - n))
    x2d = x_flat.reshape(m_rows, _LANES)

    # Tile selection: as big as requested, but keep >= _MIN_GRID_STEPS grid steps for
    # medium/large inputs so the parallel axis can shard across TensorCores (v7x).
    tm = min(tile_m, m_rows)
    if m_rows >= _MIN_GRID_STEPS * sub:
        tm = min(tm, _round_up(pl.cdiv(m_rows, _MIN_GRID_STEPS), sub))
    tm = max(_round_up(tm, sub), sub)
    grid = (pl.cdiv(m_rows, tm),)        # masked partial trailing block is fine (elementwise)

    # All four scalar params packed into a single flat (4,) f32 SMEM array.
    params = jnp.concatenate(
        [jnp.ravel(jnp.asarray(p, jnp.float32)) for p in (w1, b1, w2, b2)]
    )

    scalar_spec = pl.BlockSpec(memory_space=pltpu.MemorySpace.SMEM)
    tile_spec = pl.BlockSpec((tm, _LANES), lambda i: (i, 0))

    out2d = pl.pallas_call(
        _mlp_kernel,
        out_shape=jax.ShapeDtypeStruct((m_rows, _LANES), dtype),
        grid=grid,
        in_specs=[scalar_spec, tile_spec],
        out_specs=tile_spec,
        compiler_params=pltpu.CompilerParams(
            dimension_semantics=("parallel",),
            vmem_limit_bytes=_VMEM_LIMIT_BYTES,
        ),
    )(params, x2d)

    out_flat = out2d.reshape(-1)
    if total != n:
        out_flat = out_flat[:n]
    return out_flat.reshape(orig_shape)


def reference_forward(x, w1, b1, w2, b2):
    xf = x.astype(jnp.float32)
    h = jnp.maximum(xf @ w1 + b1, 0.0)
    return (h @ w2 + b2).astype(x.dtype)


if __name__ == "__main__":
    key = jax.random.PRNGKey(0)
    kx, k1, k2, k3, k4 = jax.random.split(key, 5)

    # Small demo batch consistent with SimpleModel's (N, 1) input.
    N = 8
    x = jax.random.normal(kx, (N, 1), dtype=jnp.float32)

    # Parameters match nn.Linear(1,1): weight (1,1), bias (1,) -> stored (1,1) here.
    w1 = jax.random.uniform(k1, (1, 1), minval=-1.0, maxval=1.0, dtype=jnp.float32)
    b1 = jax.random.uniform(k2, (1, 1), minval=-1.0, maxval=1.0, dtype=jnp.float32)
    w2 = jax.random.uniform(k3, (1, 1), minval=-1.0, maxval=1.0, dtype=jnp.float32)
    b2 = jax.random.uniform(k4, (1, 1), minval=-1.0, maxval=1.0, dtype=jnp.float32)

    out = jax.block_until_ready(simple_model_forward(x, w1, b1, w2, b2))
    ref = reference_forward(x, w1, b1, w2, b2)
    assert out.shape == (N, 1) and out.dtype == x.dtype
    assert jnp.allclose(out, ref, atol=1e-5, rtol=1e-5), "mismatch vs reference"

    # Multi-block sanity check with a ragged tail (exercises cdiv grid + masked last block).
    Nb = 3 * 512 * _LANES + 37
    xb = jax.random.normal(jax.random.PRNGKey(1), (Nb, 1), dtype=jnp.float32)
    outb = jax.block_until_ready(simple_model_forward(xb, w1, b1, w2, b2))
    refb = reference_forward(xb, w1, b1, w2, b2)
    assert jnp.allclose(outb, refb, atol=1e-5, rtol=1e-5), "mismatch vs reference (big)"

    # Native-dtype path: bf16 in -> bf16 out (f32 arithmetic inside the kernel).
    xh = jax.random.normal(jax.random.PRNGKey(2), (4096, 1), dtype=jnp.bfloat16)
    outh = jax.block_until_ready(simple_model_forward(xh, w1, b1, w2, b2))
    refh = reference_forward(xh, w1, b1, w2, b2)
    assert outh.dtype == jnp.bfloat16
    assert jnp.allclose(outh.astype(jnp.float32), refh.astype(jnp.float32),
                        atol=2e-2, rtol=2e-2), "mismatch vs reference (bf16)"

    print("KERNEL_OK")
</pallas_src>

<mosaic_0001>
module attributes {stable_mosaic.version = 11 : i64} {
  func.func @_mlp_kernel(%arg0: i32, %arg1: memref<4xf32, #tpu.memory_space<smem>>, %arg2: memref<8x128xf32, #tpu.memory_space<vmem>>, %arg3: memref<8x128xf32, #tpu.memory_space<vmem>>) attributes {dimension_semantics = [#tpu.dimension_semantics<parallel>], iteration_bounds = array<i64: 1>, scalar_prefetch = 0 : i64, scratch_operands = 0 : i64, tpu.core_type = #tpu.core_type<tc>, window_params = [{transform_indices = @transform_0, window_bounds = array<i64: 4>}, {transform_indices = @transform_1, window_bounds = array<i64: 8, 128>}, {transform_indices = @transform_2, window_bounds = array<i64: 8, 128>}]} {
    %c0 = arith.constant 0 : index
    %0 = memref.load %arg1[%c0] : memref<4xf32, #tpu.memory_space<smem>>
    %c1 = arith.constant 1 : index
    %1 = memref.load %arg1[%c1] : memref<4xf32, #tpu.memory_space<smem>>
    %c2 = arith.constant 2 : index
    %2 = memref.load %arg1[%c2] : memref<4xf32, #tpu.memory_space<smem>>
    %c3 = arith.constant 3 : index
    %3 = memref.load %arg1[%c3] : memref<4xf32, #tpu.memory_space<smem>>
    %c0_0 = arith.constant 0 : index
    %c0_1 = arith.constant 0 : index
    %4 = vector.load %arg2[%c0_0, %c0_1] : memref<8x128xf32, #tpu.memory_space<vmem>>, vector<8x128xf32>
    %5 = vector.broadcast %0 : f32 to vector<8x128xf32>
    %6 = arith.mulf %4, %5 : vector<8x128xf32>
    %7 = vector.broadcast %1 : f32 to vector<8x128xf32>
    %8 = arith.addf %6, %7 : vector<8x128xf32>
    %cst = arith.constant 0.000000e+00 : f32
    %9 = vector.broadcast %cst : f32 to vector<8x128xf32>
    %10 = arith.maximumf %8, %9 : vector<8x128xf32>
    %11 = vector.broadcast %2 : f32 to vector<8x128xf32>
    %12 = arith.mulf %10, %11 : vector<8x128xf32>
    %13 = vector.broadcast %3 : f32 to vector<8x128xf32>
    %14 = arith.addf %12, %13 : vector<8x128xf32>
    %c0_2 = arith.constant 0 : index
    %c0_3 = arith.constant 0 : index
    %15 = vector.load %arg3[%c0_2, %c0_3] : memref<8x128xf32, #tpu.memory_space<vmem>>, vector<8x128xf32>
    tpu.vector_store %arg3[%c0_2, %c0_3], %14 {strides = array<i32>} : memref<8x128xf32, #tpu.memory_space<vmem>>, vector<8x128xf32>,
    return
  }
  func.func @transform_0(%arg0: i32) -> i32 {
    %c0_i32 = arith.constant 0 : i32
    %c0_i32_0 = arith.constant 0 : i32
    return %c0_i32 : i32
  }
  func.func @transform_1(%arg0: i32) -> (i32, i32) {
    %c0_i32 = arith.constant 0 : i32
    %c0_i32_0 = arith.constant 0 : i32
    return %arg0, %c0_i32 : i32, i32
  }
  func.func @transform_2(%arg0: i32) -> (i32, i32) {
    %c0_i32 = arith.constant 0 : i32
    %c0_i32_0 = arith.constant 0 : i32
    return %arg0, %c0_i32 : i32, i32
  }
}

</mosaic_0001>

<bundles_post_ra>
// kernel: tpu_custom_call.1
= control target key start
LH: loop header
LB: loop body
LE: loop exit
PB: predicated region body
PF: predicated region fallthrough
CT: control target
= control target key end

     0   :  { %7 = vsyncpa [#allocation5], 0  ;;  %s186_s0 = inlined_call_operand.hbm [shape: f32[4], index: 0, kind: input, shape index: {}]   ;;  %s187_s1 = inlined_call_operand.hbm [shape: f32[8,128], index: 1, kind: input, shape index: {}]   ;;  %s188_s2 = inlined_call_operand.hbm [shape: f32[8,128], index: 2, kind: output, shape index: {}]  }
   0x1   :  { %8 = vsyncpa [#allocation3], 0 }
   0x2   :  { %9 = vsyncpa [#allocation4], 0  ;;  %s72_s11 = scalar_lea.hbm %s186_s0, 16 }
   0x3   :  { %p73_p0 = scmp.ne.s32.totalorder %s186_s0, %s72_s11  ;;  %p76_p1 = scmp.lt.u32.totalorder %s72_s11, %s186_s0 }
   0x5   :  { %p78_p2 = pnand %p76_p1, %p73_p0 }
   0x7   :  { %81 = shalt.err (!%p78_p2)
}
   0x8   :  { %s132_s16 = smov [#allocation2]   ;;  %s133_s19 = smov [#allocation6]  }
   0x9   :  { %17 = dma.hbm_to_smem %s186_s0, 16, %s132_s16, [#allocation5]  }
   0xa   :  { %s24_s20 = sshll.u32 %s133_s19, 4  ;;  %s82_s23 = scalar_lea.hbm %s187_s1, 128  ;;  %s25_s20 = int_to_ptr.vmem [resolvable:$true] %s24_s20 }
   0xb   :  { %p83_p3 = scmp.ne.s32.totalorder %s187_s1, %s82_s23  ;;  %p86_p4 = scmp.lt.u32.totalorder %s82_s23, %s187_s1 }
   0xd   :  { %p88_p5 = pnand %p86_p4, %p83_p3 }
   0xf   :  { %91 = shalt.err (!%p88_p5)
}
  0x10   :  { %s92_s28 = scalar_lea.vmem %s25_s20, 128  ;;  %p97_p7 = scmp.lt.s32.totalorder %s25_s20, %s25_s20 }
  0x11   :  { %p93_p6 = scmp.ne.s32.totalorder %s25_s20, %s92_s28  ;;  %p98_p8 = scmp.lt.s32.totalorder %s92_s28, %s92_s28 }
  0x13   :  { %p99_p9 = por %p98_p8, %p97_p7 }
  0x15   :  { %p100_p10 = pnand %p99_p9, %p93_p6 }
  0x17   :  { %103 = shalt.err (!%p100_p10)
}
  0x18   :  { %27 = dma.hbm_to_vmem [thread:$0]  %s187_s1, 128, %s25_s20, [#allocation3]  }
  0x19   :  { %126 = dma.done.wait [#allocation5], 16  }
  0x1a   :  { %127 = vsyncadd [#allocation5], 4294967280 }
  0x1b   :  { %128 = dma.done.wait [#allocation3], 128  }
  0x1c   :  { %129 = vsyncadd [#allocation3], 4294967168 }
  0x1d   :  { %34 = sfence }
  0x1e   :  { %s35_s30 = sld [smem:[#allocation2]]  ;;  %s66_s3 = sld [smem:[#allocation2 + $0x1]]  ;;  %v39_v0 = vld [vmem:[#allocation6] sm:$0xff] }
  0x1f   :  { %s67_s4 = sld [smem:[#allocation2 + $0x2]]  ;;  %s68_s5 = sld [smem:[#allocation2 + $0x3]] }
  0x20   :  { %s134_s6 = smov [#allocation7]  }
  0x21   :  { %s56_s7 = sshll.u32 %s134_s6, 4  ;;  %s57_s7 = int_to_ptr.vmem [resolvable:$true] %s56_s7 }
  0x22   :  { %s104_s1 = scalar_lea.vmem %s57_s7, 128  ;;  %p109_p12 = scmp.lt.s32.totalorder %s57_s7, %s57_s7 }
  0x23   :  { %p105_p11 = scmp.ne.s32.totalorder %s57_s7, %s104_s1  ;;  %p110_p13 = scmp.lt.s32.totalorder %s104_s1, %s104_s1 }
  0x24   :  { %v40_v1 = vstv %s35_s30  ;;  %v42_v2 = vstv %s66_s3 }
  0x25   :  { %v41_v3 = vmul.f32 %v40_v1, %v39_v0  ;;  %v45_v5 = vstv %s67_s4  ;;  %v47_v7 = vstv %s68_s5  ;;  %p111_p0 = por %p110_p13, %p109_p12 }
  0x27   :  { %v43_v4 = vadd.f32 %v42_v2, %v41_v3  ;;  %p112_p1 = pnand %p111_p0, %p105_p11 }
  0x29   :  { %v44_v6 = vmax.f32 %v43_v4, 0.0 }
  0x2b   :  { %v46_v8 = vmul.f32 %v45_v5, %v44_v6 }
  0x2d   :  { %v48_v9 = vadd.f32 %v47_v7, %v46_v8 }
  0x2f   :  { %49 = vst [vmem:[#allocation7] sm:$0xff] %v48_v9 }
  0x30   :  { %115 = shalt.err (!%p112_p1)
}
  0x31   :  { %s116_s10 = scalar_lea.hbm %s188_s2, 128 }
  0x32   :  { %p117_p2 = scmp.ne.s32.totalorder %s188_s2, %s116_s10  ;;  %p120_p3 = scmp.lt.u32.totalorder %s116_s10, %s188_s2 }
  0x34   :  { %p122_p4 = pnand %p120_p3, %p117_p2 }
  0x36   :  { %125 = shalt.err (!%p122_p4)
}
  0x37   :  { %59 = dma.vmem_to_hbm [thread:$0]  %s57_s7, 128, %s188_s2, [#allocation4]  }
  0x38   :  { %130 = dma.done.wait [#allocation4], 128  }
  0x39   :  { %131 = vsyncadd [#allocation4], 4294967168 }
  0x3a   :  { %63 = vsyncpa [#allocation3], 1 }
  0x3b   :  { %64 = vsyncpa [#allocation4], 1 }
  0x3c   :  { %65 = vsyncpa [#allocation5], 1 }

</bundles_post_ra>
